<compile_context>
chip_gen: v5e
topology: v5e:2x2
jax: 0.10.0
libtpu: 0.0.40
codegen_flags: <defaults>
</compile_context>

<pallas_src>
import functools

import jax
import jax.numpy as jnp
from jax.experimental import pallas as pl
from jax.experimental.pallas import tpu as pltpu


def _mlp_kernel(xt_ref, params_ref, b2_ref, out_ref):
    # xt_ref    : (2, TB)   batch on the lane axis
    # params_ref: (L, 4)    columns = [w1[:,0], w1[:,1], b1, w2[0,:]]
    # b2_ref    : (1,)      scalar bias in SMEM
    # out_ref   : (1, TB)   lane-dense output
    p = params_ref[...]
    w1c0 = p[:, 0:1]                    # (L, 1)
    w1c1 = p[:, 1:2]                    # (L, 1)
    b1c = p[:, 2:3]                     # (L, 1)
    w2c = p[:, 3:4]                     # (L, 1)

    xt = xt_ref[...]                    # (2, TB)
    x0 = xt[0:1, :]                     # (1, TB)
    x1 = xt[1:2, :]                     # (1, TB)

    # Linear1 + ReLU: two broadcast FMAs on the VPU (no MXU for K=2).
    h = jnp.maximum(w1c0 * x0 + w1c1 * x1 + b1c, 0.0)          # (L, TB)

    # Linear2: elementwise multiply + sublane reduce (XLU) + scalar bias.
    y = jnp.sum(w2c * h, axis=0, keepdims=True) + b2_ref[0]    # (1, TB)
    out_ref[...] = y.astype(out_ref.dtype)


def pack_params(w1, b1, w2):
    """Pack w1 (L,2), b1 (L,), w2 (1,L) into one (L, 4) array.

    For a static policy net this should be done once outside the per-step call;
    it is kept here so the wrapper is self-contained.
    """
    L = w1.shape[0]
    return jnp.concatenate(
        [w1.astype(jnp.float32),
         b1.reshape(L, 1).astype(jnp.float32),
         w2.reshape(L, 1).astype(jnp.float32)],
        axis=1)


@functools.partial(jax.jit, static_argnames=("batch_tile",))
def linear_simple_forward(x, w1, b1, w2, b2, *, batch_tile=2048):
    """x: (B, 2); w1: (L, 2); b1: (L,); w2: (1, L); b2: (1,). Returns (B, 1)."""
    B = x.shape[0]
    L = w1.shape[0]

    params = pack_params(w1, b1, w2)            # (L, 4): single parameter DMA
    b2_s = b2.reshape(1).astype(jnp.float32)    # scalar -> SMEM
    xt = x.T.astype(jnp.float32)                # (2, B): batch on lanes

    # Lane-dense batch tile for big batches; otherwise one full-array block
    # (block shape == full array dims satisfies the (8,128) rule).
    if B % batch_tile == 0 and batch_tile % 128 == 0:
        tb = batch_tile
    else:
        tb = B
    grid = (B // tb,)

    out = pl.pallas_call(
        _mlp_kernel,
        out_shape=jax.ShapeDtypeStruct((1, B), jnp.float32),
        grid=grid,
        in_specs=[
            pl.BlockSpec((2, tb), lambda i: (0, i)),                 # x^T
            pl.BlockSpec((L, 4), lambda i: (0, 0)),                  # packed params
            pl.BlockSpec(memory_space=pltpu.MemorySpace.SMEM),       # b2 scalar
        ],
        out_specs=pl.BlockSpec((1, tb), lambda i: (0, i)),           # lane-dense
        compiler_params=pltpu.CompilerParams(
            dimension_semantics=("parallel",)),  # shards batch grid across TCs (v7x)
    )(xt, params, b2_s)

    # Layout plumbing back to the PyTorch (B, 1) shape.
    return out.reshape(B, 1).astype(x.dtype)


if __name__ == "__main__":
    L = 32   # hidden width `l`
    B = 8    # batch of mountain-car states (state dim = 2)

    key = jax.random.PRNGKey(0)
    kx, k1, k2, k3, k4 = jax.random.split(key, 5)

    # Deterministic synthetic parameters (PyTorch Linear-style uniform ranges).
    x = jax.random.normal(kx, (B, 2), dtype=jnp.float32)
    bound1 = 1.0 / jnp.sqrt(2.0)
    w1 = jax.random.uniform(k1, (L, 2), jnp.float32, -bound1, bound1)
    b1 = jax.random.uniform(k2, (L,), jnp.float32, -bound1, bound1)
    bound2 = 1.0 / jnp.sqrt(float(L))
    w2 = jax.random.uniform(k3, (1, L), jnp.float32, -bound2, bound2)
    b2 = jax.random.uniform(k4, (1,), jnp.float32, -bound2, bound2)

    out = linear_simple_forward(x, w1, b1, w2, b2)
    out = jax.block_until_ready(out)

    # Reference in full f32 precision (avoid default bf16 matmul passes).
    hp = jax.lax.Precision.HIGHEST
    ref_h = jnp.maximum(jnp.dot(x, w1.T, precision=hp) + b1, 0.0)
    ref = jnp.dot(ref_h, w2.T, precision=hp) + b2

    assert out.shape == (B, 1)
    assert jnp.allclose(out, ref, atol=1e-5, rtol=1e-5), "mismatch vs reference"

    print("KERNEL_OK")
</pallas_src>

<mosaic_0001>
module attributes {stable_mosaic.version = 11 : i64} {
  func.func @_mlp_kernel(%arg0: i32, %arg1: memref<2x8xf32, #tpu.memory_space<vmem>>, %arg2: memref<32x4xf32, #tpu.memory_space<vmem>>, %arg3: memref<1xf32, #tpu.memory_space<smem>>, %arg4: memref<1x8xf32, #tpu.memory_space<vmem>>) attributes {dimension_semantics = [#tpu.dimension_semantics<parallel>], iteration_bounds = array<i64: 1>, scalar_prefetch = 0 : i64, scratch_operands = 0 : i64, tpu.core_type = #tpu.core_type<tc>, window_params = [{transform_indices = @transform_0, window_bounds = array<i64: 2, 8>}, {pipeline_mode = #tpu.pipeline_mode<synchronous>, transform_indices = @transform_1, window_bounds = array<i64: 32, 4>}, {transform_indices = @transform_2, window_bounds = array<i64: 1>}, {transform_indices = @transform_3, window_bounds = array<i64: 1, 8>}]} {
    %c0 = arith.constant 0 : index
    %c0_0 = arith.constant 0 : index
    %0 = vector.load %arg2[%c0, %c0_0] : memref<32x4xf32, #tpu.memory_space<vmem>>, vector<32x4xf32>
    %1 = vector.extract_strided_slice %0 {offsets = [0, 0], sizes = [32, 1], strides = [1, 1]} : vector<32x4xf32> to vector<32x1xf32>
    %2 = vector.extract_strided_slice %0 {offsets = [0, 1], sizes = [32, 1], strides = [1, 1]} : vector<32x4xf32> to vector<32x1xf32>
    %3 = vector.extract_strided_slice %0 {offsets = [0, 2], sizes = [32, 1], strides = [1, 1]} : vector<32x4xf32> to vector<32x1xf32>
    %4 = vector.extract_strided_slice %0 {offsets = [0, 3], sizes = [32, 1], strides = [1, 1]} : vector<32x4xf32> to vector<32x1xf32>
    %c0_1 = arith.constant 0 : index
    %c0_2 = arith.constant 0 : index
    %5 = vector.load %arg1[%c0_1, %c0_2] : memref<2x8xf32, #tpu.memory_space<vmem>>, vector<2x8xf32>
    %6 = vector.extract_strided_slice %5 {offsets = [0, 0], sizes = [1, 8], strides = [1, 1]} : vector<2x8xf32> to vector<1x8xf32>
    %7 = vector.extract_strided_slice %5 {offsets = [1, 0], sizes = [1, 8], strides = [1, 1]} : vector<2x8xf32> to vector<1x8xf32>
    %8 = vector.broadcast %1 : vector<32x1xf32> to vector<32x8xf32>
    %9 = vector.broadcast %6 : vector<1x8xf32> to vector<32x8xf32>
    %10 = arith.mulf %8, %9 : vector<32x8xf32>
    %11 = vector.broadcast %2 : vector<32x1xf32> to vector<32x8xf32>
    %12 = vector.broadcast %7 : vector<1x8xf32> to vector<32x8xf32>
    %13 = arith.mulf %11, %12 : vector<32x8xf32>
    %14 = arith.addf %10, %13 : vector<32x8xf32>
    %15 = vector.broadcast %3 : vector<32x1xf32> to vector<32x8xf32>
    %16 = arith.addf %14, %15 : vector<32x8xf32>
    %cst = arith.constant 0.000000e+00 : f32
    %17 = vector.broadcast %cst : f32 to vector<32x8xf32>
    %18 = arith.maximumf %16, %17 : vector<32x8xf32>
    %19 = vector.broadcast %4 : vector<32x1xf32> to vector<32x8xf32>
    %20 = arith.mulf %19, %18 : vector<32x8xf32>
    %cst_3 = arith.constant dense<0.000000e+00> : vector<8xf32>
    %21 = vector.multi_reduction <add>, %20, %cst_3 [0] : vector<32x8xf32> to vector<8xf32>
    %22 = vector.shape_cast %21 : vector<8xf32> to vector<1x8xf32>
    %c0_4 = arith.constant 0 : index
    %23 = memref.load %arg3[%c0_4] : memref<1xf32, #tpu.memory_space<smem>>
    %24 = vector.broadcast %23 : f32 to vector<1x8xf32>
    %25 = arith.addf %22, %24 : vector<1x8xf32>
    %c0_5 = arith.constant 0 : index
    %c0_6 = arith.constant 0 : index
    %26 = vector.load %arg4[%c0_5, %c0_6] : memref<1x8xf32, #tpu.memory_space<vmem>>, vector<1x8xf32>
    tpu.vector_store %arg4[%c0_5, %c0_6], %25 {strides = array<i32>} : memref<1x8xf32, #tpu.memory_space<vmem>>, vector<1x8xf32>,
    return
  }
  func.func @transform_0(%arg0: i32) -> (i32, i32) {
    %c0_i32 = arith.constant 0 : i32
    %c0_i32_0 = arith.constant 0 : i32
    return %c0_i32, %arg0 : i32, i32
  }
  func.func @transform_1(%arg0: i32) -> (i32, i32) {
    %c0_i32 = arith.constant 0 : i32
    %c0_i32_0 = arith.constant 0 : i32
    %c0_i32_1 = arith.constant 0 : i32
    return %c0_i32, %c0_i32_0 : i32, i32
  }
  func.func @transform_2(%arg0: i32) -> i32 {
    %c0_i32 = arith.constant 0 : i32
    %c0_i32_0 = arith.constant 0 : i32
    return %c0_i32 : i32
  }
  func.func @transform_3(%arg0: i32) -> (i32, i32) {
    %c0_i32 = arith.constant 0 : i32
    %c0_i32_0 = arith.constant 0 : i32
    return %c0_i32, %arg0 : i32, i32
  }
}

</mosaic_0001>

<bundles_post_ra>
// kernel: linear_simple_forward.1
= control target key start
LH: loop header
LB: loop body
LE: loop exit
PB: predicated region body
PF: predicated region fallthrough
CT: control target
= control target key end

     0   :  { %v192_v2 = vmov 0   ;;  %s238_s0 = inlined_call_operand.vmem [shape: f32[2,8], index: 0, kind: input, shape index: {}]   ;;  %s239_s1 = inlined_call_operand.vmem [shape: f32[32,4], index: 1, kind: input, shape index: {}]   ;;  %s240_s2 = inlined_call_operand.<no memory space> [shape: f32[1], index: 2, kind: input, shape index: {}]   ;;  %s241_s3 = inlined_call_operand.hbm [shape: f32[1,8], index: 3, kind: output, shape index: {}]  }
   0x1   :  { %v18_v0 = vld [vmem:[%s239_s1 + $0x10] sm:$0xff]  ;;  %v16_v1 = vld [vmem:[%s239_s1] sm:$0xff]  ;;  %156 = vset.pattern.permute.xlu1 %v192_v2  ;;  %155 = vset.pattern.permute.xlu0 %v192_v2 }
   0x2   :  { %9 = vsyncpa [#allocation4], 0  ;;  %33 = vperm.xlu1 %156, %v18_v0   ;;  %23 = vperm.xlu0 %155, %v16_v1   ;;  %v193_v3 = vmov 1   ;;  %v19_v4 = vld [vmem:[%s239_s1 + $0x18] sm:$0xff]  ;;  %v17_v5 = vld [vmem:[%s239_s1 + $0x8] sm:$0xff]  ;;  %v194_v6 = vmov 2   ;;  %v130_v63 = vstv %s240_s2 }
   0x3   :  { %157 = vset.pattern.permute.xlu2 %v193_v3  ;;  %v195_v7 = vmov 3   ;;  %v20_v16 = vld [vmem:[%s238_s0] sm:$0x3]  ;;  %vm115_vm0 = vcmask 64512   ;;  %s196_s22 = smov [#allocation3]   ;;  %s141_s26 = sshll.u32 %s241_s3, 4  ;;  %s142_s26 = int_to_ptr.hbm [resolvable:$true] %s141_s26 }
   0x4   :  { %47 = vperm.xlu2 %157, %v16_v1   ;;  %v62_v17 = vperm.slane %v20_v16, 1  ;;  %v41_v19 = vperm.slane %v20_v16, 0  ;;  %s139_s23 = sshll.u32 %s196_s22, 4  ;;  %vm132_vm1 = vcmask 57344   ;;  %s140_s23 = int_to_ptr.vmem [resolvable:$true] %s139_s23 }
   0xa   :  { %38 = vperm.xlu1 %156, %v19_v4   ;;  %28 = vperm.xlu0 %155, %v17_v5  }
   0xc   :  { %51 = vperm.xlu2 %157, %v17_v5  }
  0x12   :  { %159 = vset.pattern.permute.xlu1 %v193_v3  ;;  %158 = vset.pattern.permute.xlu0 %v193_v3 }
  0x13   :  { %59 = vperm.xlu1 %159, %v19_v4   ;;  %55 = vperm.xlu0 %158, %v18_v0  }
  0x14   :  { %160 = vset.pattern.permute.xlu2 %v194_v6 }
  0x15   :  { %72 = vperm.xlu2 %160, %v16_v1  }
  0x1b   :  { %161 = vset.pattern.permute.xlu1 %v194_v6  ;;  %162 = vset.pattern.permute.xlu0 %v194_v6 }
  0x1c   :  { %76 = vperm.xlu1 %161, %v17_v5   ;;  %84 = vperm.xlu0 %162, %v19_v4  }
  0x1d   :  { %80 = vperm.xlu2 %160, %v18_v0  }
  0x24   :  { %163 = vset.pattern.permute.xlu1 %v195_v7  ;;  %165 = vset.pattern.permute.xlu0 %v195_v7 }
  0x25   :  { %96 = vperm.xlu1 %163, %v16_v1   ;;  %164 = vset.pattern.permute.xlu2 %v195_v7 }
  0x26   :  { %100 = vperm.xlu2 %164, %v17_v5  }
  0x2d   :  { %104 = vperm.xlu1 %163, %v18_v0  }
  0x2e   :  { %108 = vperm.xlu2 %164, %v19_v4  }
  0x5e   :  { %v48_v8 = vpop.permute.xlu2 %47 }
  0x5f   :  { %v63_v21 = vmul.f32 %v62_v17, %v48_v8 }
  0x66   :  { %v52_v10 = vpop.permute.xlu2 %51 }
  0x67   :  { %v64_v25 = vmul.f32 %v62_v17, %v52_v10 }
  0x6f   :  { %v73_v13 = vpop.permute.xlu2 %72 }
  0x74   :  { %v34_v9 = vpop.permute.xlu1 %33  ;;  %v24_v11 = vpop.permute.xlu0 %23 }
  0x75   :  { %v42_v22 = vmul.f32 %v41_v19, %v24_v11  ;;  %v44_v31 = vmul.f32 %v41_v19, %v34_v9 }
  0x77   :  { %v81_v18 = vpop.permute.xlu2 %80  ;;  %v67_v26 = vadd.f32 %v63_v21, %v42_v22 }
  0x79   :  { %v87_v32 = vadd.f32 %v73_v13, %v67_v26 }
  0x7b   :  { %v91_v39 = vmax.f32 %v87_v32, 0.0 }
  0x7c   :  { %v39_v12 = vpop.permute.xlu1 %38  ;;  %v29_v14 = vpop.permute.xlu0 %28 }
  0x7d   :  { %v43_v23 = vmul.f32 %v41_v19, %v29_v14  ;;  %v45_v33 = vmul.f32 %v41_v19, %v39_v12 }
  0x7f   :  { %v68_v29 = vadd.f32 %v64_v25, %v43_v23 }
  0x80   :  { %v101_v30 = vpop.permute.xlu2 %100 }
  0x85   :  { %v60_v15 = vpop.permute.xlu1 %59  ;;  %v56_v20 = vpop.permute.xlu0 %55 }
  0x86   :  { %v66_v27 = vmul.f32 %v62_v17, %v60_v15  ;;  %v65_v28 = vmul.f32 %v62_v17, %v56_v20 }
  0x88   :  { %v69_v36 = vadd.f32 %v65_v28, %v44_v31  ;;  %v70_v37 = vadd.f32 %v66_v27, %v45_v33  ;;  %v109_v46 = vpop.permute.xlu2 %108 }
  0x8a   :  { %v89_v43 = vadd.f32 %v81_v18, %v69_v36 }
  0x8c   :  { %v93_v48 = vmax.f32 %v89_v43, 0.0 }
  0x8e   :  { %v77_v24 = vpop.permute.xlu1 %76  ;;  %v85_v35 = vpop.permute.xlu0 %84 }
  0x8f   :  { %v88_v34 = vadd.f32 %v77_v24, %v68_v29  ;;  %v90_v41 = vadd.f32 %v85_v35, %v70_v37 }
  0x91   :  { %v92_v40 = vmax.f32 %v88_v34, 0.0  ;;  %v94_v45 = vmax.f32 %v90_v41, 0.0 }
  0x93   :  { %v112_v44 = vmul.f32 %v101_v30, %v92_v40  ;;  %v114_v50 = vmul.f32 %v109_v46, %v94_v45 }
  0x95   :  { %v117_v51 = vsel %vm115_vm0, %v112_v44, 0.0  ;;  %v121_v56 = vsel %vm115_vm0, %v114_v50, 0.0 }
  0x97   :  { %v97_v38 = vpop.permute.xlu1 %96 }
  0x98   :  { %v111_v42 = vmul.f32 %v97_v38, %v91_v39 }
  0x9a   :  { %v116_v47 = vsel %vm115_vm0, %v111_v42, 0.0 }
  0x9b   :  { %v118_v53 = vadd.f32 %v117_v51, %v116_v47 }
  0x9f   :  { %v105_v49 = vpop.permute.xlu1 %104 }
  0xa0   :  { %v113_v52 = vmul.f32 %v105_v49, %v93_v48 }
  0xa2   :  { %v119_v54 = vsel %vm115_vm0, %v113_v52, 0.0 }
  0xa3   :  { %v120_v55 = vadd.f32 %v119_v54, %v118_v53 }
  0xa5   :  { %v122_v57 = vadd.f32 %v121_v56, %v120_v55 }
  0xa7   :  { %v123_v58 = vrot.slane %v122_v57, 4 }
  0xa9   :  { %v124_v59 = vadd.f32 %v123_v58, %v122_v57 }
  0xab   :  { %v125_v60 = vrot.slane %v124_v59, 2 }
  0xad   :  { %v126_v61 = vadd.f32 %v125_v60, %v124_v59 }
  0xaf   :  { %v127_v62 = vrot.slane %v126_v61, 1 }
  0xb1   :  { %v128_v0 = vadd.f32 %v127_v62, %v126_v61 }
  0xb3   :  { %v131_v1 = vadd.f32 %v130_v63, %v128_v0 }
  0xb5   :  { %133 = vst.msk [vmem:[#allocation3] sm:$0x1] %vm132_vm1, %v131_v1 }
  0xb6   :  { %144 = dma.vmem_to_hbm [thread:$0]  %s140_s23, 16, %s142_s26, [#allocation4]  }
  0xb7   :  { %190 = dma.done.wait [#allocation4], 16  }
  0xb8   :  { %191 = vsyncadd [#allocation4], 4294967280 }
  0xb9   :  { %149 = vsyncpa [#allocation4], 1 }

</bundles_post_ra>
